<compile_context>
chip_gen: v7x
topology: tpu7x:2x2x1
jax: 0.10.0
libtpu: 0.0.40
codegen_flags: <defaults>
</compile_context>

<pallas_src>
import functools
import math

import jax
import jax.numpy as jnp
from jax.experimental import pallas as pl
from jax.experimental.pallas import tpu as pltpu

# Output block constants — the wrapper-side reduction stride is derived from
# these so it cannot silently desync from the kernel's store shape.
_OUT_ROWS = 8
_OUT_COLS = 128


def _round_up(x, m):
    return ((x + m - 1) // m) * m


def _infonce_kernel(scale_ref, logits_ref, labels_ref, out_ref, *, n_valid, tile_n):
    i = pl.program_id(0)

    # scale = exp(logit_scale)  (scalar, SMEM)
    scale = jnp.exp(scale_ref[0, 0].astype(jnp.float32))

    x_raw = logits_ref[...]                                     # [TILE_N, C] input dtype
    c = x_raw.shape[1]

    # Row max in the input dtype (max is exact); upcast inside the fused
    # shift + scale so no standalone full-tile f32 cast buffer is live.
    row_max = jnp.max(x_raw, axis=1, keepdims=True)             # [TILE_N, 1]
    shifted = (x_raw.astype(jnp.float32)
               - row_max.astype(jnp.float32)) * scale           # [TILE_N, C] f32, <= 0

    sum_exp = jnp.sum(jnp.exp(shifted), axis=1, keepdims=True)  # [TILE_N, 1]

    # True-class (shifted, scaled) logit via broadcast compare against a (1, C) iota.
    col_ids = jax.lax.broadcasted_iota(jnp.int32, (1, c), 1)    # [1, C]
    mask = col_ids == labels_ref[...]                           # [TILE_N, C]
    true_shifted = jnp.sum(jnp.where(mask, shifted, 0.0), axis=1, keepdims=True)

    # per-example loss:
    #   lse(scale*x) - scale*x[true]
    #     = log(sum exp(scale*(x - rowmax))) - scale*(x[true] - rowmax)
    loss = jnp.log(sum_exp) - true_shifted                      # [TILE_N, 1]

    # Rows past N (the last tile reads out-of-bounds -> unspecified data) are
    # dropped with a select, so NaN/Inf there cannot propagate into the sum.
    row_ids = i * tile_n + jax.lax.broadcasted_iota(jnp.int32, (tile_n, 1), 0)
    loss = jnp.where(row_ids < n_valid, loss, 0.0)

    partial = jnp.sum(loss)
    # lane-dense (8,128) unmasked store of the replicated per-tile partial sum
    out_ref[...] = jnp.broadcast_to(jnp.reshape(partial, (1, 1)),
                                    (_OUT_ROWS, _OUT_COLS))


def _vmem_budgets():
    """Return (per-step VMEM byte budget, vmem_limit_bytes) for this generation."""
    vmem = None
    try:
        vmem = int(pltpu.get_tpu_info().vmem_capacity_bytes)
    except Exception:
        vmem = None
    if vmem is not None and vmem >= 100 * 1024 * 1024:
        # v5e / v6e: 128 MiB physical VMEM -> big tiles, fewer grid steps.
        return 64 * 1024 * 1024, 96 * 1024 * 1024
    # v7x (64 MiB per TC) or unknown: leave headroom for Mosaic internals.
    return 28 * 1024 * 1024, 48 * 1024 * 1024


def unidirectional_infonce(y_pred, y_true, logit_scale, *, tile_n=None):
    """Equivalent of UnidirectionalInfonce.forward.

    y_pred:      [N, C] float logits
    y_true:      [N]    int class indices
    logit_scale: scalar learnable parameter (log of 1/temperature)
    """
    n, c = y_pred.shape
    itemsize = jnp.dtype(y_pred.dtype).itemsize

    step_budget, vmem_limit = _vmem_budgets()

    if tile_n is None:
        # Per-step footprint ~= 2 double-buffered input tiles (input dtype)
        # + ~3 f32 full-tile temporaries (shifted / exp / where).
        per_row_bytes = c * (2 * itemsize + 3 * 4)
        rows = max(8, (step_budget // max(per_row_bytes, 1)) // 8 * 8)
        # keep >= 2 grid steps when possible so v7x's second TensorCore has work
        half_rows = _round_up(-(-n // 2), 8)
        tile_n = int(min(rows, max(8, half_rows), _round_up(n, 8)))
    else:
        tile_n = max(8, (int(tile_n) // 8) * 8)
        tile_n = min(tile_n, _round_up(n, 8))

    num_tiles = pl.cdiv(n, tile_n)

    labels = jnp.reshape(y_true.astype(jnp.int32), (n, 1))
    scale_arr = jnp.reshape(jnp.asarray(logit_scale, jnp.float32), (1, 1))

    kernel = functools.partial(_infonce_kernel, n_valid=n, tile_n=tile_n)

    partials = pl.pallas_call(
        kernel,
        out_shape=jax.ShapeDtypeStruct((num_tiles * _OUT_ROWS, _OUT_COLS), jnp.float32),
        grid=(num_tiles,),
        in_specs=[
            pl.BlockSpec(memory_space=pltpu.SMEM),               # logit_scale (1,1)
            pl.BlockSpec((tile_n, c), lambda i: (i, 0)),          # logits row tile
            pl.BlockSpec((tile_n, 1), lambda i: (i, 0)),          # labels row tile
        ],
        out_specs=pl.BlockSpec((_OUT_ROWS, _OUT_COLS), lambda i: (i, 0)),
        compiler_params=pltpu.CompilerParams(
            dimension_semantics=("parallel",),
            vmem_limit_bytes=vmem_limit,
        ),
        cost_estimate=pl.CostEstimate(
            flops=int(6 * n * c),
            transcendentals=int(n * c),
            bytes_accessed=int(n * c * itemsize + n * 4
                               + num_tiles * _OUT_ROWS * _OUT_COLS * 4),
        ),
    )(scale_arr, y_pred, labels)

    # Each tile's (_OUT_ROWS, _OUT_COLS) block holds one replicated partial sum.
    return jnp.sum(partials[::_OUT_ROWS, 0]) * (1.0 / n)


def _reference(y_pred, y_true, logit_scale):
    scaled = jnp.exp(logit_scale) * y_pred.astype(jnp.float32)
    return jnp.mean(
        jax.nn.logsumexp(scaled, axis=1)
        - jnp.take_along_axis(scaled, y_true[:, None], axis=1)[:, 0]
    )


if __name__ == "__main__":
    # Deterministic parameter init (matches nn.Parameter(ones([]) * log(1/0.07)))
    logit_scale_temp = 0.07
    logit_scale = jnp.float32(math.log(1.0 / logit_scale_temp))

    key = jax.random.PRNGKey(0)
    k1, k2, k3, k4 = jax.random.split(key, 4)

    # Small synthetic inputs: batch=8 examples, 32 classes (single tile).
    y_pred = jax.random.normal(k1, (8, 32), dtype=jnp.float32)
    y_true = jax.random.randint(k2, (8,), 0, 32, dtype=jnp.int32)
    loss = unidirectional_infonce(y_pred, y_true, logit_scale)
    jax.block_until_ready(loss)
    ref = _reference(y_pred, y_true, logit_scale)
    assert jnp.allclose(loss, ref, rtol=1e-5, atol=1e-5), (loss, ref)

    # Multiple row tiles + out-of-bounds last tile (no host-side pad), fixed tile_n.
    y_pred2 = jax.random.normal(k3, (200, 96), dtype=jnp.float32)
    y_true2 = jax.random.randint(k4, (200,), 0, 96, dtype=jnp.int32)
    loss2 = unidirectional_infonce(y_pred2, y_true2, logit_scale, tile_n=64)
    jax.block_until_ready(loss2)
    ref2 = _reference(y_pred2, y_true2, logit_scale)
    assert jnp.allclose(loss2, ref2, rtol=1e-5, atol=1e-5), (loss2, ref2)

    # Auto tile selection path (exercises the ceil(N/2) cap + OOB last tile).
    loss3 = unidirectional_infonce(y_pred2, y_true2, logit_scale)
    jax.block_until_ready(loss3)
    assert jnp.allclose(loss3, ref2, rtol=1e-5, atol=1e-5), (loss3, ref2)

    print("KERNEL_OK")
</pallas_src>

<mosaic_0001>
module attributes {stable_mosaic.version = 11 : i64} {
  func.func @_infonce_kernel(%arg0: i32, %arg1: memref<1x1xf32, #tpu.memory_space<smem>>, %arg2: memref<8x32xf32, #tpu.memory_space<vmem>>, %arg3: memref<8x1xi32, #tpu.memory_space<vmem>>, %arg4: memref<8x128xf32, #tpu.memory_space<vmem>>) attributes {dimension_semantics = [#tpu.dimension_semantics<parallel>], iteration_bounds = array<i64: 1>, scalar_prefetch = 0 : i64, scratch_operands = 0 : i64, tpu.core_type = #tpu.core_type<tc>, window_params = [{transform_indices = @transform_0, window_bounds = array<i64: 1, 1>}, {transform_indices = @transform_1, window_bounds = array<i64: 8, 32>}, {transform_indices = @transform_2, window_bounds = array<i64: 8, 1>}, {transform_indices = @transform_3, window_bounds = array<i64: 8, 128>}]} {
    %c0 = arith.constant 0 : index
    %c0_0 = arith.constant 0 : index
    %0 = memref.load %arg1[%c0, %c0_0] : memref<1x1xf32, #tpu.memory_space<smem>>
    %1 = math.exp %0 : f32
    %c0_1 = arith.constant 0 : index
    %c0_2 = arith.constant 0 : index
    %2 = vector.load %arg2[%c0_1, %c0_2] : memref<8x32xf32, #tpu.memory_space<vmem>>, vector<8x32xf32>
    %cst = arith.constant dense<0xFF800000> : vector<8xf32>
    %3 = vector.multi_reduction <maximumf>, %2, %cst [1] : vector<8x32xf32> to vector<8xf32>
    %4 = vector.shape_cast %3 : vector<8xf32> to vector<8x1xf32>
    %5 = vector.broadcast %4 : vector<8x1xf32> to vector<8x32xf32>
    %6 = arith.subf %2, %5 : vector<8x32xf32>
    %7 = vector.broadcast %1 : f32 to vector<8x32xf32>
    %8 = arith.mulf %6, %7 : vector<8x32xf32>
    %9 = math.exp %8 : vector<8x32xf32>
    %cst_3 = arith.constant dense<0.000000e+00> : vector<8xf32>
    %10 = vector.multi_reduction <add>, %9, %cst_3 [1] : vector<8x32xf32> to vector<8xf32>
    %11 = vector.shape_cast %10 : vector<8xf32> to vector<8x1xf32>
    %12 = tpu.iota {dimensions = array<i32: 1>} : vector<1x32xi32>
    %c0_4 = arith.constant 0 : index
    %c0_5 = arith.constant 0 : index
    %13 = vector.load %arg3[%c0_4, %c0_5] : memref<8x1xi32, #tpu.memory_space<vmem>>, vector<8x1xi32>
    %14 = vector.broadcast %12 : vector<1x32xi32> to vector<8x32xi32>
    %15 = vector.broadcast %13 : vector<8x1xi32> to vector<8x32xi32>
    %16 = arith.cmpi eq, %14, %15 : vector<8x32xi32>
    %cst_6 = arith.constant 0.000000e+00 : f32
    %17 = vector.broadcast %cst_6 : f32 to vector<8x32xf32>
    %18 = arith.select %16, %8, %17 : vector<8x32xi1>, vector<8x32xf32>
    %cst_7 = arith.constant dense<0.000000e+00> : vector<8xf32>
    %19 = vector.multi_reduction <add>, %18, %cst_7 [1] : vector<8x32xf32> to vector<8xf32>
    %20 = vector.shape_cast %19 : vector<8xf32> to vector<8x1xf32>
    %21 = math.log %11 : vector<8x1xf32>
    %22 = arith.subf %21, %20 : vector<8x1xf32>
    %c8_i32 = arith.constant 8 : i32
    %23 = arith.muli %arg0, %c8_i32 : i32
    %24 = tpu.iota {dimensions = array<i32: 0>} : vector<8x1xi32>
    %25 = vector.broadcast %23 : i32 to vector<8x1xi32>
    %26 = arith.addi %25, %24 : vector<8x1xi32>
    %c8_i32_8 = arith.constant 8 : i32
    %27 = vector.broadcast %c8_i32_8 : i32 to vector<8x1xi32>
    %28 = arith.cmpi slt, %26, %27 : vector<8x1xi32>
    %cst_9 = arith.constant 0.000000e+00 : f32
    %29 = vector.broadcast %cst_9 : f32 to vector<8x1xf32>
    %30 = arith.select %28, %22, %29 : vector<8x1xi1>, vector<8x1xf32>
    %31 = vector.shape_cast %30 : vector<8x1xf32> to vector<1x8x1xf32>
    %cst_10 = arith.constant dense<0.000000e+00> : vector<1xf32>
    %32 = vector.multi_reduction <add>, %31, %cst_10 [1, 2] : vector<1x8x1xf32> to vector<1xf32>
    %33 = vector.shape_cast %32 : vector<1xf32> to vector<1x1x1xf32>
    %34 = vector.extract %33[0, 0, 0] : f32 from vector<1x1x1xf32>
    %35 = vector.broadcast %34 : f32 to vector<1x1xf32>
    %36 = vector.shape_cast %35 : vector<1x1xf32> to vector<1x1xf32>
    %37 = vector.broadcast %36 : vector<1x1xf32> to vector<8x128xf32>
    %c0_11 = arith.constant 0 : index
    %c0_12 = arith.constant 0 : index
    %38 = vector.load %arg4[%c0_11, %c0_12] : memref<8x128xf32, #tpu.memory_space<vmem>>, vector<8x128xf32>
    tpu.vector_store %arg4[%c0_11, %c0_12], %37 {strides = array<i32>} : memref<8x128xf32, #tpu.memory_space<vmem>>, vector<8x128xf32>,
    return
  }
  func.func @transform_0(%arg0: i32) -> (i32, i32) {
    %c0_i32 = arith.constant 0 : i32
    %c0_i32_0 = arith.constant 0 : i32
    %c0_i32_1 = arith.constant 0 : i32
    return %c0_i32, %c0_i32_0 : i32, i32
  }
  func.func @transform_1(%arg0: i32) -> (i32, i32) {
    %c0_i32 = arith.constant 0 : i32
    %c0_i32_0 = arith.constant 0 : i32
    return %arg0, %c0_i32 : i32, i32
  }
  func.func @transform_2(%arg0: i32) -> (i32, i32) {
    %c0_i32 = arith.constant 0 : i32
    %c0_i32_0 = arith.constant 0 : i32
    return %arg0, %c0_i32 : i32, i32
  }
  func.func @transform_3(%arg0: i32) -> (i32, i32) {
    %c0_i32 = arith.constant 0 : i32
    %c0_i32_0 = arith.constant 0 : i32
    return %arg0, %c0_i32 : i32, i32
  }
}

</mosaic_0001>

<bundles_post_ra>
// kernel: tpu_custom_call.1
= control target key start
LH: loop header
LB: loop body
LE: loop exit
PB: predicated region body
PF: predicated region fallthrough
CT: control target
= control target key end

     0   :  { %vm22_vm0 = vcmask 261120   ;;  %s165_s0 = inlined_call_operand.<no memory space> [shape: f32[1,1], index: 0, kind: input, shape index: {}]   ;;  %s166_s1 = inlined_call_operand.vmem [shape: f32[8,32], index: 1, kind: input, shape index: {}]   ;;  %s167_s2 = inlined_call_operand.vmem [shape: s32[8,1], index: 2, kind: input, shape index: {}]   ;;  %s168_s3 = inlined_call_operand.hbm [shape: f32[8,128], index: 3, kind: output, shape index: {}]  }
   0x1   :  { %v21_v0 = vld [vmem:[%s166_s1] sm:$0xff]  ;;  %v17_v1 = vstv %s165_s0 }
   0x2   :  { %9 = vsyncpa [#allocation4], 0  ;;  %v23_v2 = vsel %vm22_vm0, %v21_v0, -inf  ;;  %v119_v3 = vmov 0   ;;  %v18_v4 = vmul.f32 1.442695, %v17_v1  ;;  %v34_v12 = vlaneseq }
   0x3   :  { %88 = vset.pattern.permute.xlu0 %v119_v3  ;;  %v36_v6 = vld [vmem:[%s167_s2] sm:$0xff]  ;;  %vm55_vm2 = vcmask 7168   ;;  %s120_s0 = smov [#allocation3]  }
   0x4   :  { %24 = vmax.xlane.f32.xlu0 %v23_v2  ;;  %89 = vpow2.f32 %v18_v4  ;;  %v35_v13 = vand.u32 127, %v34_v12  ;;  %s74_s2 = sshll.u32 %s120_s0, 4  ;;  %s75_s2 = int_to_ptr.vmem [resolvable:$true] %s74_s2 }
   0x5   :  { %s95_s19 = scalar_lea.vmem %s75_s2, 128  ;;  %p100_p1 = scmp.lt.s32.totalorder %s75_s2, %s75_s2 }
   0x6   :  { %p96_p0 = scmp.ne.s32.totalorder %s75_s2, %s95_s19  ;;  %p101_p2 = scmp.lt.s32.totalorder %s95_s19, %s95_s19 }
   0x8   :  { %p102_p3 = por %p101_p2, %p100_p1 }
   0xa   :  { %p103_p4 = pnand %p102_p3, %p96_p0 }
   0xe   :  { %v90_v5 = vpop.eup %89 }
   0xf   :  { %82 = vpush %v90_v5 }
  0x1a   :  { %38 = vperm.xlu0 %88, %v36_v6  }
  0x40   :  { %s83_s1 = spop %82 }
  0x41   :  { %v27_v8 = vstv %s83_s1 }
  0x91   :  { %v25_v7 = vpop.xlane.xlu0 %24 }
  0x92   :  { %v26_v9 = vsub.f32 %v21_v0, %v25_v7 }
  0x94   :  { %v28_v10 = vmul.f32 %v27_v8, %v26_v9 }
  0x96   :  { %v29_v11 = vmul.f32 1.442695, %v28_v10 }
  0x98   :  { %91 = vpow2.f32 %v29_v11 }
  0x99   :  { %v39_v14 = vpop.permute.xlu0 %38 }
  0x9a   :  { %vm40_vm1 = vcmp.eq.s32.totalorder %v35_v13, %v39_v14 }
  0x9b   :  { %v41_v17 = vsel %vm40_vm1, %v28_v10, 0.0 }
  0x9c   :  { %v42_v18 = vsel %vm22_vm0, %v41_v17, 0.0 }
  0xa2   :  { %v92_v15 = vpop.eup %91 }
  0xa3   :  { %v31_v16 = vsel %vm22_vm0, %v92_v15, 0.0 }
  0xa4   :  { %32 = vadd.xlane.f32.xlu1 %v31_v16 }
  0xa8   :  { %43 = vadd.xlane.f32.xlu1 %v42_v18 }
 0x131   :  { %v33_v19 = vpop.xlane.xlu1 %32 }
 0x132   :  { %93 = vlog2.f32 %v33_v19 }
 0x135   :  { %v44_v22 = vpop.xlane.xlu1 %43 }
 0x13c   :  { %v94_v20 = vpop.eup %93 }
 0x13d   :  { %v46_v21 = vmul.f32 0.6931472, %v94_v20 }
 0x13f   :  { %v47_v23 = vsub.f32 %v46_v21, %v44_v22 }
 0x141   :  { %v56_v24 = vsel %vm55_vm2, %v47_v23, 0.0 }
 0x142   :  { %57 = vadd.xlane.f32.xlu1 %v56_v24 }
 0x1cf   :  { %v58_v25 = vpop.xlane.xlu1 %57 }
 0x1d0   :  { %v59_v26 = vrot.slane %v58_v25, 4 }
 0x1d2   :  { %v60_v27 = vadd.f32 %v59_v26, %v58_v25 }
 0x1d4   :  { %v61_v28 = vrot.slane %v60_v27, 2 }
 0x1d6   :  { %v62_v29 = vadd.f32 %v61_v28, %v60_v27 }
 0x1d8   :  { %v63_v30 = vrot.slane %v62_v29, 1 }
 0x1da   :  { %v64_v31 = vadd.f32 %v63_v30, %v62_v29 }
 0x1dc   :  { %84 = vpush %v64_v31 }
 0x20d   :  { %s85_s18 = spop %84 }
 0x20e   :  { %v66_v32 = vstv %s85_s18 }
 0x20f   :  { %67 = vst [vmem:[#allocation3] sm:$0xff] %v66_v32 }
 0x210   :  { %106 = shalt.err (!%p103_p4)
}
 0x211   :  { %s107_s22 = scalar_lea.hbm %s168_s3, 128 }
 0x212   :  { %p108_p5 = scmp.ne.s32.totalorder %s168_s3, %s107_s22  ;;  %p111_p6 = scmp.lt.u32.totalorder %s107_s22, %s168_s3 }
 0x214   :  { %p113_p7 = pnand %p111_p6, %p108_p5 }
 0x216   :  { %116 = shalt.err (!%p113_p7)
}
 0x217   :  { %77 = dma.vmem_to_hbm [thread:$0]  %s75_s2, 128, %s168_s3, [#allocation4]  }
 0x218   :  { %117 = dma.done.wait [#allocation4], 128  }
 0x219   :  { %118 = vsyncadd [#allocation4], 4294967168 }
 0x21a   :  { %81 = vsyncpa [#allocation4], 1 }

</bundles_post_ra>
